<compile_context>
chip_gen: v7x
topology: tpu7x:2x2x1
jax: 0.10.0
libtpu: 0.0.40
codegen_flags: <defaults>
</compile_context>

<pallas_src>
import math
import jax
import jax.numpy as jnp
from jax.experimental import pallas as pl
from jax.experimental.pallas import tpu as pltpu

N_OBSERVATIONS = 10
N_ACTIONS = 9
HIDDEN = 32
LEAKY_SLOPE = 0.01   # PyTorch F.leaky_relu default negative_slope

IN_PAD = 16          # n_observations padded 10 -> 16 (bf16 sublane packing of W1's in-axis)
OUT_PAD = 128        # n_actions padded 9 -> 128 (lane-dense, unmasked output stores)
TB_MAX = 2048        # batch-tile rows; ~3 MiB double-buffered VMEM, safe on v5e/v6e/v7x
ROW_ALIGN = 16       # batch padding unit (bf16 sublane packing)


def _round_up(n, m):
    return (n + m - 1) // m * m


def _leaky_relu(x):
    return jnp.where(x >= 0, x, LEAKY_SLOPE * x)


def dqn_kernel(x_ref, w1_ref, b1_ref, w2_ref, b2_ref, w3_ref, b3_ref, o_ref):
    # bf16 operands on the MXU, f32 accumulation; bias add + leaky_relu in f32.
    x = x_ref[...]                                                        # [TB, IN_PAD] bf16
    h1 = jnp.dot(x, w1_ref[...], preferred_element_type=jnp.float32) + b1_ref[...]
    h1 = _leaky_relu(h1).astype(jnp.bfloat16)
    h2 = jnp.dot(h1, w2_ref[...], preferred_element_type=jnp.float32) + b2_ref[...]
    h2 = _leaky_relu(h2).astype(jnp.bfloat16)
    out = jnp.dot(h2, w3_ref[...], preferred_element_type=jnp.float32) + b3_ref[...]
    o_ref[...] = out                                                      # [TB, OUT_PAD] f32, lane-dense


def _dqn_pallas(x_pad, kparams, tb):
    bp = x_pad.shape[0]
    w1, b1, w2, b2, w3, b3 = kparams
    return pl.pallas_call(
        dqn_kernel,
        out_shape=jax.ShapeDtypeStruct((bp, OUT_PAD), jnp.float32),
        grid=(bp // tb,),
        in_specs=[
            pl.BlockSpec((tb, IN_PAD), lambda i: (i, 0)),        # activations stream per tile
            pl.BlockSpec((IN_PAD, HIDDEN), lambda i: (0, 0)),    # weights/biases stay resident
            pl.BlockSpec((1, HIDDEN), lambda i: (0, 0)),
            pl.BlockSpec((HIDDEN, HIDDEN), lambda i: (0, 0)),
            pl.BlockSpec((1, HIDDEN), lambda i: (0, 0)),
            pl.BlockSpec((HIDDEN, OUT_PAD), lambda i: (0, 0)),
            pl.BlockSpec((1, OUT_PAD), lambda i: (0, 0)),
        ],
        out_specs=pl.BlockSpec((tb, OUT_PAD), lambda i: (i, 0)),
        compiler_params=pltpu.CompilerParams(
            dimension_semantics=("parallel",),   # megacore-shard batch tiles (2x on v7x)
        ),
    )(x_pad, w1, b1, w2, b2, w3, b3)


def prepare_params(params):
    """f32 [in,out] / [1,out] params -> padded kernel-layout params (bf16 weights, f32 biases)."""
    w1, b1, w2, b2, w3, b3 = params
    w1p = jnp.zeros((IN_PAD, HIDDEN), jnp.float32).at[:N_OBSERVATIONS, :].set(w1)
    w3p = jnp.zeros((HIDDEN, OUT_PAD), jnp.float32).at[:, :N_ACTIONS].set(w3)
    b3p = jnp.zeros((1, OUT_PAD), jnp.float32).at[:, :N_ACTIONS].set(b3)
    return (
        w1p.astype(jnp.bfloat16), b1.astype(jnp.float32),
        w2.astype(jnp.bfloat16), b2.astype(jnp.float32),
        w3p.astype(jnp.bfloat16), b3p.astype(jnp.float32),
    )


def dqn_forward(x, kparams):
    """x: [B, n_observations] float32 -> [B, n_actions] float32."""
    B = x.shape[0]
    tb = min(TB_MAX, _round_up(B, ROW_ALIGN))
    bp = _round_up(B, tb)
    x_pad = jnp.zeros((bp, IN_PAD), jnp.bfloat16)
    x_pad = x_pad.at[:B, :N_OBSERVATIONS].set(x.astype(jnp.bfloat16))
    out = _dqn_pallas(x_pad, kparams, tb)
    return out[:B, :N_ACTIONS]


def init_params(key):
    """Deterministic init mimicking nn.Linear's default U(-1/sqrt(fan_in), 1/sqrt(fan_in))."""
    def linear_init(k, fan_in, fan_out):
        kw, kb = jax.random.split(k)
        bound = 1.0 / math.sqrt(fan_in)
        # Stored as [in, out] (kernel layout), biases as [1, out] for clean broadcasting.
        w = jax.random.uniform(kw, (fan_in, fan_out), jnp.float32, -bound, bound)
        b = jax.random.uniform(kb, (1, fan_out), jnp.float32, -bound, bound)
        return w, b

    k1, k2, k3 = jax.random.split(key, 3)
    w1, b1 = linear_init(k1, N_OBSERVATIONS, HIDDEN)
    w2, b2 = linear_init(k2, HIDDEN, HIDDEN)
    w3, b3 = linear_init(k3, HIDDEN, N_ACTIONS)
    return (w1, b1, w2, b2, w3, b3)


def dqn_reference(x, params, matmul_dtype=jnp.float32):
    """Pure-JAX reference. matmul_dtype=bfloat16 mimics the kernel's MXU operand precision."""
    w1, b1, w2, b2, w3, b3 = params

    def mm(a, w):
        return jnp.dot(a.astype(matmul_dtype), w.astype(matmul_dtype),
                       preferred_element_type=jnp.float32)

    h1 = _leaky_relu(mm(x, w1) + b1)
    h2 = _leaky_relu(mm(h1, w2) + b2)
    return mm(h2, w3) + b3


if __name__ == "__main__":
    key = jax.random.PRNGKey(0)
    kx, kp = jax.random.split(key)

    batch = 2
    x = jax.random.normal(kx, (batch, N_OBSERVATIONS), jnp.float32)
    params = init_params(kp)
    kparams = prepare_params(params)

    out = dqn_forward(x, kparams)
    out = jax.block_until_ready(out)
    assert out.shape == (batch, N_ACTIONS), out.shape

    # Tight check vs a reference that uses the same bf16 matmul-operand precision.
    ref_bf16 = dqn_reference(x, params, matmul_dtype=jnp.bfloat16)
    assert jnp.allclose(out, ref_bf16, atol=1e-3, rtol=1e-3), "mismatch vs bf16-faithful reference"

    # Loose sanity check vs the full-f32 reference (bf16 weights => small numeric drift).
    ref_f32 = dqn_reference(x, params, matmul_dtype=jnp.float32)
    assert jnp.allclose(out, ref_f32, atol=5e-2, rtol=5e-2), "mismatch vs f32 reference"

    print("KERNEL_OK")
</pallas_src>

<mosaic_0001>
module attributes {stable_mosaic.version = 11 : i64} {
  func.func @dqn_kernel(%arg0: i32, %arg1: memref<16x16xbf16, #tpu.memory_space<vmem>>, %arg2: memref<16x32xbf16, #tpu.memory_space<vmem>>, %arg3: memref<1x32xf32, #tpu.memory_space<vmem>>, %arg4: memref<32x32xbf16, #tpu.memory_space<vmem>>, %arg5: memref<1x32xf32, #tpu.memory_space<vmem>>, %arg6: memref<32x128xbf16, #tpu.memory_space<vmem>>, %arg7: memref<1x128xf32, #tpu.memory_space<vmem>>, %arg8: memref<16x128xf32, #tpu.memory_space<vmem>>) attributes {dimension_semantics = [#tpu.dimension_semantics<parallel>], iteration_bounds = array<i64: 1>, scalar_prefetch = 0 : i64, scratch_operands = 0 : i64, tpu.core_type = #tpu.core_type<tc>, window_params = [{transform_indices = @transform_0, window_bounds = array<i64: 16, 16>}, {pipeline_mode = #tpu.pipeline_mode<synchronous>, transform_indices = @transform_1, window_bounds = array<i64: 16, 32>}, {pipeline_mode = #tpu.pipeline_mode<synchronous>, transform_indices = @transform_2, window_bounds = array<i64: 1, 32>}, {pipeline_mode = #tpu.pipeline_mode<synchronous>, transform_indices = @transform_3, window_bounds = array<i64: 32, 32>}, {pipeline_mode = #tpu.pipeline_mode<synchronous>, transform_indices = @transform_4, window_bounds = array<i64: 1, 32>}, {pipeline_mode = #tpu.pipeline_mode<synchronous>, transform_indices = @transform_5, window_bounds = array<i64: 32, 128>}, {pipeline_mode = #tpu.pipeline_mode<synchronous>, transform_indices = @transform_6, window_bounds = array<i64: 1, 128>}, {transform_indices = @transform_7, window_bounds = array<i64: 16, 128>}]} {
    %c0 = arith.constant 0 : index
    %c0_0 = arith.constant 0 : index
    %0 = vector.load %arg1[%c0, %c0_0] : memref<16x16xbf16, #tpu.memory_space<vmem>>, vector<16x16xbf16>
    %c0_1 = arith.constant 0 : index
    %c0_2 = arith.constant 0 : index
    %1 = vector.load %arg2[%c0_1, %c0_2] : memref<16x32xbf16, #tpu.memory_space<vmem>>, vector<16x32xbf16>
    %cst = arith.constant dense<0.000000e+00> : vector<16x32xf32>
    %2 = tpu.matmul %0, %1, %cst {dimension_numbers = #tpu.dot_dimension_numbers<[1], [0], [0], [1], [0, 0, 1, 1], [], []>} : vector<16x16xbf16>, vector<16x32xbf16>, vector<16x32xf32> -> vector<16x32xf32>
    %c0_3 = arith.constant 0 : index
    %c0_4 = arith.constant 0 : index
    %3 = vector.load %arg3[%c0_3, %c0_4] : memref<1x32xf32, #tpu.memory_space<vmem>>, vector<1x32xf32>
    %4 = vector.broadcast %3 : vector<1x32xf32> to vector<16x32xf32>
    %5 = arith.addf %2, %4 : vector<16x32xf32>
    %cst_5 = arith.constant 0.000000e+00 : f32
    %6 = vector.broadcast %cst_5 : f32 to vector<16x32xf32>
    %7 = arith.cmpf oge, %5, %6 : vector<16x32xf32>
    %cst_6 = arith.constant 0.00999999977 : f32
    %8 = vector.broadcast %cst_6 : f32 to vector<16x32xf32>
    %9 = arith.mulf %8, %5 : vector<16x32xf32>
    %10 = arith.select %7, %5, %9 : vector<16x32xi1>, vector<16x32xf32>
    %11 = arith.truncf %10 : vector<16x32xf32> to vector<16x32xbf16>
    %c0_7 = arith.constant 0 : index
    %c0_8 = arith.constant 0 : index
    %12 = vector.load %arg4[%c0_7, %c0_8] : memref<32x32xbf16, #tpu.memory_space<vmem>>, vector<32x32xbf16>
    %cst_9 = arith.constant dense<0.000000e+00> : vector<16x32xf32>
    %13 = tpu.matmul %11, %12, %cst_9 {dimension_numbers = #tpu.dot_dimension_numbers<[1], [0], [0], [1], [0, 0, 1, 1], [], []>} : vector<16x32xbf16>, vector<32x32xbf16>, vector<16x32xf32> -> vector<16x32xf32>
    %c0_10 = arith.constant 0 : index
    %c0_11 = arith.constant 0 : index
    %14 = vector.load %arg5[%c0_10, %c0_11] : memref<1x32xf32, #tpu.memory_space<vmem>>, vector<1x32xf32>
    %15 = vector.broadcast %14 : vector<1x32xf32> to vector<16x32xf32>
    %16 = arith.addf %13, %15 : vector<16x32xf32>
    %cst_12 = arith.constant 0.000000e+00 : f32
    %17 = vector.broadcast %cst_12 : f32 to vector<16x32xf32>
    %18 = arith.cmpf oge, %16, %17 : vector<16x32xf32>
    %cst_13 = arith.constant 0.00999999977 : f32
    %19 = vector.broadcast %cst_13 : f32 to vector<16x32xf32>
    %20 = arith.mulf %19, %16 : vector<16x32xf32>
    %21 = arith.select %18, %16, %20 : vector<16x32xi1>, vector<16x32xf32>
    %22 = arith.truncf %21 : vector<16x32xf32> to vector<16x32xbf16>
    %c0_14 = arith.constant 0 : index
    %c0_15 = arith.constant 0 : index
    %23 = vector.load %arg6[%c0_14, %c0_15] : memref<32x128xbf16, #tpu.memory_space<vmem>>, vector<32x128xbf16>
    %cst_16 = arith.constant dense<0.000000e+00> : vector<16x128xf32>
    %24 = tpu.matmul %22, %23, %cst_16 {dimension_numbers = #tpu.dot_dimension_numbers<[1], [0], [0], [1], [0, 0, 1, 1], [], []>} : vector<16x32xbf16>, vector<32x128xbf16>, vector<16x128xf32> -> vector<16x128xf32>
    %c0_17 = arith.constant 0 : index
    %c0_18 = arith.constant 0 : index
    %25 = vector.load %arg7[%c0_17, %c0_18] : memref<1x128xf32, #tpu.memory_space<vmem>>, vector<1x128xf32>
    %26 = vector.broadcast %25 : vector<1x128xf32> to vector<16x128xf32>
    %27 = arith.addf %24, %26 : vector<16x128xf32>
    %c0_19 = arith.constant 0 : index
    %c0_20 = arith.constant 0 : index
    %28 = vector.load %arg8[%c0_19, %c0_20] : memref<16x128xf32, #tpu.memory_space<vmem>>, vector<16x128xf32>
    tpu.vector_store %arg8[%c0_19, %c0_20], %27 {strides = array<i32>} : memref<16x128xf32, #tpu.memory_space<vmem>>, vector<16x128xf32>,
    return
  }
  func.func @transform_0(%arg0: i32) -> (i32, i32) {
    %c0_i32 = arith.constant 0 : i32
    %c0_i32_0 = arith.constant 0 : i32
    return %arg0, %c0_i32 : i32, i32
  }
  func.func @transform_1(%arg0: i32) -> (i32, i32) {
    %c0_i32 = arith.constant 0 : i32
    %c0_i32_0 = arith.constant 0 : i32
    %c0_i32_1 = arith.constant 0 : i32
    return %c0_i32, %c0_i32_0 : i32, i32
  }
  func.func @transform_2(%arg0: i32) -> (i32, i32) {
    %c0_i32 = arith.constant 0 : i32
    %c0_i32_0 = arith.constant 0 : i32
    %c0_i32_1 = arith.constant 0 : i32
    return %c0_i32, %c0_i32_0 : i32, i32
  }
  func.func @transform_3(%arg0: i32) -> (i32, i32) {
    %c0_i32 = arith.constant 0 : i32
    %c0_i32_0 = arith.constant 0 : i32
    %c0_i32_1 = arith.constant 0 : i32
    return %c0_i32, %c0_i32_0 : i32, i32
  }
  func.func @transform_4(%arg0: i32) -> (i32, i32) {
    %c0_i32 = arith.constant 0 : i32
    %c0_i32_0 = arith.constant 0 : i32
    %c0_i32_1 = arith.constant 0 : i32
    return %c0_i32, %c0_i32_0 : i32, i32
  }
  func.func @transform_5(%arg0: i32) -> (i32, i32) {
    %c0_i32 = arith.constant 0 : i32
    %c0_i32_0 = arith.constant 0 : i32
    %c0_i32_1 = arith.constant 0 : i32
    return %c0_i32, %c0_i32_0 : i32, i32
  }
  func.func @transform_6(%arg0: i32) -> (i32, i32) {
    %c0_i32 = arith.constant 0 : i32
    %c0_i32_0 = arith.constant 0 : i32
    %c0_i32_1 = arith.constant 0 : i32
    return %c0_i32, %c0_i32_0 : i32, i32
  }
  func.func @transform_7(%arg0: i32) -> (i32, i32) {
    %c0_i32 = arith.constant 0 : i32
    %c0_i32_0 = arith.constant 0 : i32
    return %arg0, %c0_i32 : i32, i32
  }
}

</mosaic_0001>

<bundles_post_ra>
// kernel: tpu_custom_call.1
= control target key start
LH: loop header
LB: loop body
LE: loop exit
PB: predicated region body
PF: predicated region fallthrough
CT: control target
= control target key end

     0   :  { %12 = vsyncpa [#allocation3], 0  ;;  %s588_s0 = inlined_call_operand.hbm [shape: bf16[16,16], index: 0, kind: input, shape index: {}]   ;;  %s589_s1 = inlined_call_operand.hbm [shape: bf16[16,32], index: 1, kind: input, shape index: {}]   ;;  %s590_s2 = inlined_call_operand.vmem [shape: f32[1,32], index: 2, kind: input, shape index: {}]   ;;  %s591_s3 = inlined_call_operand.hbm [shape: bf16[32,32], index: 3, kind: input, shape index: {}]   ;;  %s592_s4 = inlined_call_operand.vmem [shape: f32[1,32], index: 4, kind: input, shape index: {}]   ;;  %s593_s5 = inlined_call_operand.vmem [shape: bf16[32,128], index: 5, kind: input, shape index: {}]   ;;  %s594_s6 = inlined_call_operand.vmem [shape: f32[1,128], index: 6, kind: input, shape index: {}]   ;;  %s595_s7 = inlined_call_operand.hbm [shape: f32[16,128], index: 7, kind: output, shape index: {}]  }
   0x1   :  { %13 = vsyncpa [#allocation6], 0 }
   0x2   :  { %14 = vsyncpa [#allocation4], 0  ;;  %s457_s24 = smov [#allocation5]   ;;  %s458_s26 = smov [#allocation2]  }
   0x3   :  { %s32_s25 = sshll.u32 %s457_s24, 4  ;;  %s20_s27 = sshll.u32 %s458_s26, 4  ;;  %s33_s25 = int_to_ptr.vmem [resolvable:$true] %s32_s25  ;;  %s507_s27 = int_to_ptr.vmem [resolvable:$true] %s20_s27 }
   0x4   :  { %s363_s30 = scalar_lea.hbm %s589_s1, 128 }
   0x5   :  { %p364_p0 = scmp.ne.s32.totalorder %s589_s1, %s363_s30  ;;  %p367_p1 = scmp.lt.u32.totalorder %s363_s30, %s589_s1 }
   0x7   :  { %p369_p2 = pnand %p367_p1, %p364_p0 }
   0x9   :  { %372 = shalt.err (!%p369_p2)
}
   0xa   :  { %s373_s12 = scalar_lea.vmem %s33_s25, 128  ;;  %p378_p4 = scmp.lt.s32.totalorder %s33_s25, %s33_s25 }
   0xb   :  { %p374_p3 = scmp.ne.s32.totalorder %s33_s25, %s373_s12  ;;  %p379_p5 = scmp.lt.s32.totalorder %s373_s12, %s373_s12 }
   0xd   :  { %p380_p6 = por %p379_p5, %p378_p4 }
   0xf   :  { %p381_p7 = pnand %p380_p6, %p374_p3 }
  0x11   :  { %384 = shalt.err (!%p381_p7)
}
  0x12   :  { %s459_s13 = smov 64   ;;  %s460_s14 = smov 4  }
  0x13   :  { %38 = dma.hbm_to_vmem [thread:$0]  %s589_s1, 128, %s33_s25, [#allocation6], %s459_s13, %s459_s13, %s460_s14  }
  0x14   :  { %s385_s19 = scalar_lea.hbm %s588_s0, 128 }
  0x15   :  { %p386_p8 = scmp.ne.s32.totalorder %s588_s0, %s385_s19  ;;  %p389_p9 = scmp.lt.u32.totalorder %s385_s19, %s588_s0 }
  0x17   :  { %p391_p10 = pnand %p389_p9, %p386_p8 }
  0x19   :  { %394 = shalt.err (!%p391_p10)
}
  0x1a   :  { %s395_s24 = scalar_lea.vmem %s507_s27, 128  ;;  %p400_p12 = scmp.lt.s32.totalorder %s507_s27, %s507_s27 }
  0x1b   :  { %p396_p11 = scmp.ne.s32.totalorder %s507_s27, %s395_s24  ;;  %p401_p13 = scmp.lt.s32.totalorder %s395_s24, %s395_s24 }
  0x1d   :  { %p402_p0 = por %p401_p13, %p400_p12 }
  0x1f   :  { %p403_p1 = pnand %p402_p0, %p396_p11 }
  0x21   :  { %406 = shalt.err (!%p403_p1)
}
  0x22   :  { %26 = dma.hbm_to_vmem [thread:$0]  %s588_s0, 128, %s507_s27, [#allocation3], %s459_s13, %s459_s13, %s460_s14  }
  0x23   :  { %s461_s26 = smov [#allocation7]   ;;  %s407_s8 = scalar_lea.hbm %s591_s3, 256 }
  0x24   :  { %s46_s28 = sshll.u32 %s461_s26, 4  ;;  %p408_p2 = scmp.ne.s32.totalorder %s591_s3, %s407_s8  ;;  %s47_s28 = int_to_ptr.vmem [resolvable:$true] %s46_s28 }
  0x25   :  { %p411_p3 = scmp.lt.u32.totalorder %s407_s8, %s591_s3 }
  0x27   :  { %p413_p4 = pnand %p411_p3, %p408_p2 }
  0x29   :  { %416 = shalt.err (!%p413_p4)
}
  0x2a   :  { %s417_s15 = scalar_lea.vmem %s47_s28, 256  ;;  %p422_p6 = scmp.lt.s32.totalorder %s47_s28, %s47_s28 }
  0x2b   :  { %p418_p5 = scmp.ne.s32.totalorder %s47_s28, %s417_s15  ;;  %p423_p7 = scmp.lt.s32.totalorder %s417_s15, %s417_s15 }
  0x2d   :  { %p424_p8 = por %p423_p7, %p422_p6 }
  0x2f   :  { %p425_p9 = pnand %p424_p8, %p418_p5 }
  0x31   :  { %428 = shalt.err (!%p425_p9)
}
  0x32   :  { %52 = dma.hbm_to_vmem [thread:$0]  %s591_s3, 256, %s47_s28, [#allocation6], %s459_s13, %s459_s13, %s460_s14  }
  0x33   :  { %451 = dma.done.wait [#allocation3], 128  }
  0x34   :  { %452 = vsyncadd [#allocation3], 4294967168 }
  0x35   :  { %453 = dma.done.wait [#allocation6], 384  }
  0x36   :  { %454 = vsyncadd [#allocation6], 4294966912  ;;  %v462_v0 = vmov 0.0   ;;  %vm463_vm0 = vmmov 0   ;;  %v357_v1 = vld [vmem:[#allocation5] sm:$0xff]   ;;  %v358_v2 = vld [vmem:[#allocation2] sm:$0xff]  }
  0x37   :  { %325 = vmatprep.subr.bf16.mxu0 %v462_v0  ;;  %327 = vmatprep.mubr.msk.bf16.mxu0 %vm463_vm0, %v462_v0  ;;  %vm91_vm1 = vcmask 130048   ;;  %v359_v3 = vld [vmem:[#allocation7] sm:$0xff]   ;;  %v360_v4 = vld [vmem:[#allocation7 + $0x8] sm:$0xff]   ;;  %vm166_vm4 = vcmask 261120  }
  0x38   :  { %331 = vmatprep.subr.bf16.mxu1 %v462_v0  ;;  %335 = vmatprep.mubr.msk.bf16.mxu1 %vm463_vm0, %v462_v0  ;;  %v305_v5 = vld [vmem:[%s590_s2] ss:$0 sm:$0xff]  ;;  %v362_v18 = vld [vmem:[%s593_s5 + $0x8] sm:$0xff]  }
  0x39   :  { %326 = vmatpush3.bf16.msra.mxu0 %v357_v1  ;;  %332 = vmatpush3.bf16.msra.mxu1 %v359_v3  ;;  %v361_v17 = vld [vmem:[%s593_s5] sm:$0xff]  }
  0x3a   :  { %339 = vmatprep.subr.bf16.mxu0 %v462_v0  ;;  %333 = vmatprep.subr.bf16.mxu1 %v462_v0  ;;  %v309_v19 = vld [vmem:[%s592_s4] ss:$0 sm:$0xff]  ;;  %s464_s4 = smov [#allocation8]  }
  0x3b   :  { %v313_v31 = vld [vmem:[%s594_s6] ss:$0 sm:$0xff]  ;;  %s292_s21 = sshll.u32 %s464_s4, 4  ;;  %s293_s21 = int_to_ptr.vmem [resolvable:$true] %s292_s21 }
  0x3c   :  { %328 = vmatmul.mubr.msk.bf16.vlgmr.msra.gmra.mrb[0].mxu0 %vm91_vm1, %v358_v2  ;;  %s429_s22 = scalar_lea.vmem %s293_s21, 256  ;;  %p434_p11 = scmp.lt.s32.totalorder %s293_s21, %s293_s21 }
  0x3d   :  { %343 = vmatprep.mubr.msk.bf16.mxu0 %vm463_vm0, %v462_v0  ;;  %334 = vmatpush3.bf16.msra.mxu1 %v360_v4  ;;  %p430_p10 = scmp.ne.s32.totalorder %s293_s21, %s429_s22  ;;  %p435_p12 = scmp.lt.s32.totalorder %s429_s22, %s429_s22 }
  0x3e   :  { %340 = vmatpush3.bf16.msra.mxu0 %v361_v17 }
  0x3f   :  { %341 = vmatprep.subr.bf16.mxu0 %v462_v0  ;;  %p436_p13 = por %p435_p12, %p434_p11 }
  0x41   :  { %p437_p0 = pnand %p436_p13, %p430_p10 }
  0x42   :  { %342 = vmatpush3.bf16.msra.mxu0 %v362_v18 }
 0x10f   :  { %v129_v6 = vpop.f32.mrb[0].mxu0 }
 0x110   :  { %v130_v7 = vadd.f32 %v305_v5, %v129_v6  ;;  %v329_v8 = vpop.f32.mrb[1].mxu0 }
 0x111   :  { %v132_v9 = vpop.f32.mrb[2].mxu0 }
 0x112   :  { %v138_v10 = vmul.f32 0.01, %v130_v7  ;;  %v133_v11 = vadd.f32 %v305_v5, %v132_v9  ;;  %v330_v12 = vpop.f32.mrb[3].mxu0  ;;  %vm136_vm2 = vcmp.ge.f32.partialorder %v130_v7, 0.0 }
 0x114   :  { %vm137_vm3 = vcmp.ge.f32.partialorder %v133_v11, 0.0  ;;  %v139_v13 = vmul.f32 0.01, %v133_v11  ;;  %v140_v14 = vsel %vm136_vm2, %v130_v7, %v138_v10 }
 0x116   :  { %v141_v15 = vsel %vm137_vm3, %v133_v11, %v139_v13 }
 0x117   :  { %v142_v16 = vpack.c.bf16 %v141_v15, %v140_v14 }
 0x119   :  { %336 = vmatmul.mubr.msk.bf16.vlgmr.msra.gmra.mrb[0].mxu1 %vm166_vm4, %v142_v16 }
 0x1ec   :  { %v204_v20 = vpop.f32.mrb[0].mxu1 }
 0x1ed   :  { %v205_v21 = vadd.f32 %v309_v19, %v204_v20  ;;  %v337_v22 = vpop.f32.mrb[1].mxu1 }
 0x1ee   :  { %v207_v23 = vpop.f32.mrb[2].mxu1 }
 0x1ef   :  { %v213_v24 = vmul.f32 0.01, %v205_v21  ;;  %v208_v25 = vadd.f32 %v309_v19, %v207_v23  ;;  %v338_v26 = vpop.f32.mrb[3].mxu1  ;;  %vm211_vm5 = vcmp.ge.f32.partialorder %v205_v21, 0.0 }
 0x1f1   :  { %vm212_vm6 = vcmp.ge.f32.partialorder %v208_v25, 0.0  ;;  %v214_v27 = vmul.f32 0.01, %v208_v25  ;;  %v215_v28 = vsel %vm211_vm5, %v205_v21, %v213_v24 }
 0x1f3   :  { %v216_v29 = vsel %vm212_vm6, %v208_v25, %v214_v27 }
 0x1f4   :  { %v217_v30 = vpack.c.bf16 %v216_v29, %v215_v28 }
 0x1f6   :  { %344 = vmatmul.mubr.msk.bf16.vlgmr.msra.gmra.mrb[4].mxu0 %vm166_vm4, %v217_v30 }
 0x2c9   :  { %v278_v32 = vpop.f32.mrb[4].mxu0 }
 0x2ca   :  { %v279_v33 = vadd.f32 %v313_v31, %v278_v32  ;;  %v345_v34 = vpop.f32.mrb[5].mxu0 }
 0x2cb   :  { %v281_v35 = vpop.f32.mrb[6].mxu0 }
 0x2cc   :  { %285 = vst [vmem:[#allocation8] sm:$0xff] %v279_v33  ;;  %v282_v36 = vadd.f32 %v313_v31, %v281_v35  ;;  %v346_v37 = vpop.f32.mrb[7].mxu0 }
 0x2ce   :  { %286 = vst [vmem:[#allocation8 + $0x8] sm:$0xff] %v282_v36 }
 0x2cf   :  { %440 = shalt.err (!%p437_p0)
}
 0x2d0   :  { %s441_s24 = scalar_lea.hbm %s595_s7, 256 }
 0x2d1   :  { %p442_p1 = scmp.ne.s32.totalorder %s595_s7, %s441_s24  ;;  %p445_p2 = scmp.lt.u32.totalorder %s441_s24, %s595_s7 }
 0x2d3   :  { %p447_p3 = pnand %p445_p2, %p442_p1 }
 0x2d5   :  { %450 = shalt.err (!%p447_p3)
}
 0x2d6   :  { %s465_s29 = smov 128   ;;  %s466_s30 = smov 8  }
 0x2d7   :  { %298 = dma.vmem_to_hbm [thread:$0]  %s293_s21, 256, %s595_s7, [#allocation4], %s465_s29, %s465_s29, %s466_s30  }
 0x2d8   :  { %455 = dma.done.wait [#allocation4], 256  }
 0x2d9   :  { %456 = vsyncadd [#allocation4], 4294967040 }
 0x2da   :  { %302 = vsyncpa [#allocation3], 1 }
 0x2db   :  { %303 = vsyncpa [#allocation6], 1 }
 0x2dc   :  { %304 = vsyncpa [#allocation4], 1 }

</bundles_post_ra>
